<compile_context>
chip_gen: v7x
topology: tpu7x:2x2x1
jax: 0.10.0
libtpu: 0.0.40
codegen_flags: <defaults>
</compile_context>

<pallas_src>
import functools

import jax
import jax.numpy as jnp
from jax.experimental import pallas as pl
from jax.experimental.pallas import tpu as pltpu

BN_EPS = 1e-5


# ----------------------------------------------------------------------------- kernel
def _stem_kernel(x_ref, w1_ref, b1_ref, w2_ref, b2_ref, o_ref, y1_ref, *,
                 n_rows, w_out, n_row_pairs):
    """Fused Stem forward for one (batch, conv2-output-row-tile) grid step.

    x_ref : (1, n_rows, w_out, 64) bf16  conv1 im2col patches, column-phase packed:
            lanes [0:32) = 27(+5 pad) taps of even conv1-output columns,
            lanes [32:64) = odd columns.  Row s <-> conv1 output row 2*TH2*t + s - 1
            (row 0 of the first tile is an all-zero row).
    w1_ref: (32, 64) bf16 conv1 weight with bn1 scale folded in; b1_ref: (1, 64) f32.
    w2_ref: (576, 64) bf16 conv2 weight with bn2 scale folded in (tap-major blocks of 64);
            b2_ref: (1, 64) f32.
    o_ref : (1, n_row_pairs, w_out, 128) f32  conv2 output; two consecutive output rows
            packed along lanes (lane-dense stores).
    y1_ref: (n_rows, w_out + 1, 128) f32 VMEM scratch holding the zero-padded conv1
            output for this tile; column pairs packed along lanes:
            lanes [0:64) = padded-y1 column 2p, lanes [64:128) = column 2p+1.
    """
    w1 = w1_ref[...]
    b1 = b1_ref[...]
    b2 = b2_ref[...]
    zrow = jnp.zeros((1, 64), jnp.float32)

    # ---------------- conv1 + bn1: fill the y1 scratch (stays in VMEM) ----------------
    def conv1_row(s, carry):
        xr = x_ref[0, s]                                               # (w_out, 64) bf16
        ye = jnp.dot(xr[:, 0:32], w1, preferred_element_type=jnp.float32) + b1
        yo = jnp.dot(xr[:, 32:64], w1, preferred_element_type=jnp.float32) + b1
        # padded-y1 even columns (c=2p): col 0 is the left zero pad, then odd y1 cols.
        g_even = jnp.concatenate([zrow, yo], axis=0)                   # (w_out+1, 64)
        # padded-y1 odd columns (c=2p+1): even y1 cols, then the right zero pad.
        g_odd = jnp.concatenate([ye, zrow], axis=0)                    # (w_out+1, 64)
        y1_ref[s] = jnp.concatenate([g_even, g_odd], axis=-1)          # (w_out+1, 128)
        return carry

    jax.lax.fori_loop(0, n_rows, conv1_row, 0)

    # Scratch row 0 of the first row-tile is conv2's zero padding (y1 row "-1"),
    # not "bn1 bias of a zero patch" -- force it to zero.
    @pl.when(pl.program_id(1) == 0)
    def _():
        y1_ref[0] = jnp.zeros((w_out + 1, 128), jnp.float32)

    # ---------------- conv2 + bn2 + relu: two output rows per iteration ----------------
    def conv2_rows(m, carry):
        acc0 = jnp.zeros((w_out, 64), jnp.float32)
        acc1 = jnp.zeros((w_out, 64), jnp.float32)
        for kh in range(3):
            row0 = y1_ref[4 * m + kh]                                  # (w_out+1, 128)
            row1 = y1_ref[4 * m + 2 + kh]
            for kw in range(3):
                k = kh * 3 + kw
                wk = w2_ref[k * 64:(k + 1) * 64, :]                    # (64, 64) bf16
                c0, g = kw // 2, kw % 2
                a0 = row0[c0:c0 + w_out, g * 64:(g + 1) * 64].astype(jnp.bfloat16)
                a1 = row1[c0:c0 + w_out, g * 64:(g + 1) * 64].astype(jnp.bfloat16)
                acc0 = acc0 + jnp.dot(a0, wk, preferred_element_type=jnp.float32)
                acc1 = acc1 + jnp.dot(a1, wk, preferred_element_type=jnp.float32)
        r0 = jnp.maximum(acc0 + b2, 0.0)
        r1 = jnp.maximum(acc1 + b2, 0.0)
        o_ref[0, m] = jnp.concatenate([r0, r1], axis=-1)               # (w_out, 128)
        return carry

    jax.lax.fori_loop(0, n_row_pairs, conv2_rows, 0)


# ----------------------------------------------------------------------------- glue
def _fold_bn(gamma, beta, mean, var):
    scale = gamma / jnp.sqrt(var + BN_EPS)
    bias = beta - mean * scale
    return scale.reshape(1, -1), bias.reshape(1, -1)


def _pick_row_tile(h2, cap=32):
    """Largest even divisor of h2 that is <= cap (h2 is even)."""
    th = min(h2, cap)
    th -= th % 2
    while th > 2 and h2 % th:
        th -= 2
    return max(th, 2)


def stem_forward(x_nchw, params, *, row_tile_cap=32):
    """(B, 3, H, W) -> (B, 64, H//4, W//4), matching the PyTorch Stem forward (eval-mode BN)."""
    x = jnp.transpose(x_nchw, (0, 2, 3, 1)).astype(jnp.float32)        # NCHW -> NHWC
    B, H, W, cin = x.shape
    assert cin == 3
    # TODO(synk): support spatial sizes not divisible by (8, 4); the kernel packs
    # row/column pairs into the 128-lane dim, which needs even H//4 and even W//2.
    assert H % 8 == 0 and W % 4 == 0, (H, W)
    H1, W1 = H // 2, W // 2
    H2, W2 = H // 4, W // 4

    # ---- fold eval-mode BN into the conv weights / a per-channel bias ----
    s1, b1 = _fold_bn(params["bn1_gamma"], params["bn1_beta"],
                      params["bn1_mean"], params["bn1_var"])
    s2, b2 = _fold_bn(params["bn2_gamma"], params["bn2_beta"],
                      params["bn2_mean"], params["bn2_var"])
    # conv1: (64,3,3,3) OIHW -> (27,64) with rows ordered (kh,kw,cin); pad K 27 -> 32.
    w1 = jnp.transpose(params["conv1_w"], (2, 3, 1, 0)).reshape(27, 64) * s1
    w1 = jnp.pad(w1, ((0, 5), (0, 0))).astype(jnp.bfloat16)
    # conv2: (64,64,3,3) OIHW -> (576,64), one (cin,cout) block of 64 rows per tap.
    w2 = (jnp.transpose(params["conv2_w"], (2, 3, 1, 0)).reshape(576, 64) * s2
          ).astype(jnp.bfloat16)

    # ---- conv1 im2col on the tiny 3-channel input (once, in XLA) ----
    xp = jnp.pad(x, ((0, 0), (1, 1), (1, 1), (0, 0)))
    taps = [xp[:, kh:kh + 2 * H1:2, kw:kw + 2 * W1:2, :]
            for kh in range(3) for kw in range(3)]
    x1 = jnp.concatenate(taps, axis=-1)                                # (B, H1, W1, 27)
    x1 = jnp.pad(x1, ((0, 0), (0, 0), (0, 0), (0, 5)))                 # K: 27 -> 32
    # pack even/odd conv1-output columns side by side -> (B, H1, W2, 64)
    x1 = x1.reshape(B, H1, W2, 64)
    # one zero row on top so every row-tile reads a uniform (2*TH2+1)-row window
    x1 = jnp.pad(x1, ((0, 0), (1, 0), (0, 0), (0, 0)))                 # (B, H1+1, W2, 64)

    th2 = _pick_row_tile(H2, row_tile_cap)      # conv2 output rows per grid step (even)
    n_t = H2 // th2
    n_rows = 2 * th2 + 1                        # conv1 rows per tile incl. 1-row halo
    idx = 2 * th2 * jnp.arange(n_t)[:, None] + jnp.arange(n_rows)[None, :]
    x1w = x1[:, idx]                                                   # (B, n_t, n_rows, W2, 64)
    x1w = x1w.reshape(B * n_t, n_rows, W2, 64).astype(jnp.bfloat16)

    kernel = functools.partial(_stem_kernel, n_rows=n_rows, w_out=W2,
                               n_row_pairs=th2 // 2)
    out_packed = pl.pallas_call(
        kernel,
        out_shape=jax.ShapeDtypeStruct((B, H2 // 2, W2, 128), jnp.float32),
        grid_spec=pltpu.PrefetchScalarGridSpec(
            num_scalar_prefetch=0,
            grid=(B, n_t),
            in_specs=[
                pl.BlockSpec((1, n_rows, W2, 64),
                             lambda b, t: (b * n_t + t, 0, 0, 0)),
                pl.BlockSpec((32, 64), lambda b, t: (0, 0)),
                pl.BlockSpec((1, 64), lambda b, t: (0, 0)),
                pl.BlockSpec((576, 64), lambda b, t: (0, 0)),
                pl.BlockSpec((1, 64), lambda b, t: (0, 0)),
            ],
            out_specs=pl.BlockSpec((1, th2 // 2, W2, 128),
                                   lambda b, t: (b, t, 0, 0)),
            scratch_shapes=[pltpu.VMEM((n_rows, W2 + 1, 128), jnp.float32)],
        ),
        compiler_params=pltpu.CompilerParams(
            dimension_semantics=("parallel", "parallel")),
    )(x1w, w1, b1, w2, b2)

    # unpack the row-pair lane packing, then NHWC -> NCHW
    out = out_packed.reshape(B, H2 // 2, W2, 2, 64)
    out = jnp.transpose(out, (0, 1, 3, 2, 4)).reshape(B, H2, W2, 64)
    return jnp.transpose(out, (0, 3, 1, 2))


def init_stem_params(key):
    k1, k2, *kb = jax.random.split(key, 10)
    return {
        "conv1_w": 0.1 * jax.random.normal(k1, (64, 3, 3, 3), jnp.float32),
        "conv2_w": 0.05 * jax.random.normal(k2, (64, 64, 3, 3), jnp.float32),
        "bn1_gamma": 1.0 + 0.1 * jax.random.normal(kb[0], (64,), jnp.float32),
        "bn1_beta": 0.1 * jax.random.normal(kb[1], (64,), jnp.float32),
        "bn1_mean": 0.1 * jax.random.normal(kb[2], (64,), jnp.float32),
        "bn1_var": jax.random.uniform(kb[3], (64,), jnp.float32, 0.5, 1.5),
        "bn2_gamma": 1.0 + 0.1 * jax.random.normal(kb[4], (64,), jnp.float32),
        "bn2_beta": 0.1 * jax.random.normal(kb[5], (64,), jnp.float32),
        "bn2_mean": 0.1 * jax.random.normal(kb[6], (64,), jnp.float32),
        "bn2_var": jax.random.uniform(kb[7], (64,), jnp.float32, 0.5, 1.5),
    }


# ----------------------------------------------------------------------------- reference
def _stem_reference(x_nchw, params):
    x = jnp.transpose(x_nchw, (0, 2, 3, 1))

    def conv(inp, w_oihw):
        w_hwio = jnp.transpose(w_oihw, (2, 3, 1, 0))
        return jax.lax.conv_general_dilated(
            inp, w_hwio, window_strides=(2, 2), padding=((1, 1), (1, 1)),
            dimension_numbers=("NHWC", "HWIO", "NHWC"))

    def bn(inp, g, b, m, v):
        return (inp - m) / jnp.sqrt(v + BN_EPS) * g + b

    y = bn(conv(x, params["conv1_w"]), params["bn1_gamma"], params["bn1_beta"],
           params["bn1_mean"], params["bn1_var"])
    y = bn(conv(y, params["conv2_w"]), params["bn2_gamma"], params["bn2_beta"],
           params["bn2_mean"], params["bn2_var"])
    y = jnp.maximum(y, 0.0)
    return jnp.transpose(y, (0, 3, 1, 2))


# ----------------------------------------------------------------------------- main
if __name__ == "__main__":
    key = jax.random.PRNGKey(0)
    kx, kp = jax.random.split(key)
    x = jax.random.normal(kx, (2, 3, 16, 16), jnp.float32)  # (b, 3, y, x)
    params = init_stem_params(kp)

    stem_fn = jax.jit(stem_forward)
    out = jax.block_until_ready(stem_fn(x, params))
    assert out.shape == (2, 64, 4, 4), out.shape

    ref = jax.block_until_ready(_stem_reference(x, params))
    max_err = float(jnp.max(jnp.abs(out - ref)))
    # bf16 MXU inputs with f32 accumulation -> looser tolerance than a pure-f32 path.
    assert jnp.allclose(out, ref, atol=5e-2, rtol=5e-2), max_err

    print("KERNEL_OK")
</pallas_src>

<mosaic_0001>
module attributes {stable_mosaic.version = 11 : i64} {
  func.func @_stem_kernel(%arg0: i32, %arg1: i32, %arg2: memref<1x9x4x64xbf16, #tpu.memory_space<vmem>>, %arg3: memref<32x64xbf16, #tpu.memory_space<vmem>>, %arg4: memref<1x64xf32, #tpu.memory_space<vmem>>, %arg5: memref<576x64xbf16, #tpu.memory_space<vmem>>, %arg6: memref<1x64xf32, #tpu.memory_space<vmem>>, %arg7: memref<1x2x4x128xf32, #tpu.memory_space<vmem>>, %arg8: memref<9x5x128xf32, #tpu.memory_space<vmem>>) attributes {dimension_semantics = [#tpu.dimension_semantics<parallel>, #tpu.dimension_semantics<parallel>], iteration_bounds = array<i64: 2, 1>, scalar_prefetch = 0 : i64, scratch_operands = 1 : i64, tpu.core_type = #tpu.core_type<tc>, window_params = [{transform_indices = @transform_0, window_bounds = array<i64: 1, 9, 4, 64>}, {pipeline_mode = #tpu.pipeline_mode<synchronous>, transform_indices = @transform_1, window_bounds = array<i64: 32, 64>}, {pipeline_mode = #tpu.pipeline_mode<synchronous>, transform_indices = @transform_2, window_bounds = array<i64: 1, 64>}, {pipeline_mode = #tpu.pipeline_mode<synchronous>, transform_indices = @transform_3, window_bounds = array<i64: 576, 64>}, {pipeline_mode = #tpu.pipeline_mode<synchronous>, transform_indices = @transform_4, window_bounds = array<i64: 1, 64>}, {transform_indices = @transform_5, window_bounds = array<i64: 1, 2, 4, 128>}]} {
    %c0 = arith.constant 0 : index
    %c0_0 = arith.constant 0 : index
    %0 = vector.load %arg3[%c0, %c0_0] : memref<32x64xbf16, #tpu.memory_space<vmem>>, vector<32x64xbf16>
    %c0_1 = arith.constant 0 : index
    %c0_2 = arith.constant 0 : index
    %1 = vector.load %arg4[%c0_1, %c0_2] : memref<1x64xf32, #tpu.memory_space<vmem>>, vector<1x64xf32>
    %c0_3 = arith.constant 0 : index
    %c0_4 = arith.constant 0 : index
    %2 = vector.load %arg6[%c0_3, %c0_4] : memref<1x64xf32, #tpu.memory_space<vmem>>, vector<1x64xf32>
    %cst = arith.constant 0.000000e+00 : f32
    %3 = vector.broadcast %cst : f32 to vector<1x64xf32>
    %c0_i32 = arith.constant 0 : i32
    %c9_i32 = arith.constant 9 : i32
    %4 = arith.addi %c0_i32, %c9_i32 : i32
    %c1_i32 = arith.constant 1 : i32
    scf.for %arg9 = %c0_i32 to %4 step %c1_i32  : i32 {
      %c0_11 = arith.constant 0 : index
      %9 = arith.index_cast %arg9 : i32 to index
      %c0_12 = arith.constant 0 : index
      %c0_13 = arith.constant 0 : index
      %10 = vector.load %arg2[%c0_11, %9, %c0_12, %c0_13] : memref<1x9x4x64xbf16, #tpu.memory_space<vmem>>, vector<1x1x4x64xbf16>
      %11 = vector.shape_cast %10 : vector<1x1x4x64xbf16> to vector<4x64xbf16>
      %12 = vector.extract_strided_slice %11 {offsets = [0, 0], sizes = [4, 32], strides = [1, 1]} : vector<4x64xbf16> to vector<4x32xbf16>
      %cst_14 = arith.constant dense<0.000000e+00> : vector<4x64xf32>
      %13 = tpu.matmul %12, %0, %cst_14 {dimension_numbers = #tpu.dot_dimension_numbers<[1], [0], [0], [1], [0, 0, 1, 1], [], []>} : vector<4x32xbf16>, vector<32x64xbf16>, vector<4x64xf32> -> vector<4x64xf32>
      %14 = vector.broadcast %1 : vector<1x64xf32> to vector<4x64xf32>
      %15 = arith.addf %13, %14 : vector<4x64xf32>
      %16 = vector.extract_strided_slice %11 {offsets = [0, 32], sizes = [4, 32], strides = [1, 1]} : vector<4x64xbf16> to vector<4x32xbf16>
      %cst_15 = arith.constant dense<0.000000e+00> : vector<4x64xf32>
      %17 = tpu.matmul %16, %0, %cst_15 {dimension_numbers = #tpu.dot_dimension_numbers<[1], [0], [0], [1], [0, 0, 1, 1], [], []>} : vector<4x32xbf16>, vector<32x64xbf16>, vector<4x64xf32> -> vector<4x64xf32>
      %18 = vector.broadcast %1 : vector<1x64xf32> to vector<4x64xf32>
      %19 = arith.addf %17, %18 : vector<4x64xf32>
      %20 = tpu.concatenate %3, %19 in 0 : vector<1x64xf32>, vector<4x64xf32> -> vector<5x64xf32>
      %21 = tpu.concatenate %15, %3 in 0 : vector<4x64xf32>, vector<1x64xf32> -> vector<5x64xf32>
      %22 = tpu.concatenate %20, %21 in 1 : vector<5x64xf32>, vector<5x64xf32> -> vector<5x128xf32>
      %23 = arith.index_cast %arg9 : i32 to index
      %c0_16 = arith.constant 0 : index
      %c0_17 = arith.constant 0 : index
      %24 = vector.load %arg8[%23, %c0_16, %c0_17] : memref<9x5x128xf32, #tpu.memory_space<vmem>>, vector<1x5x128xf32>
      %25 = vector.shape_cast %24 : vector<1x5x128xf32> to vector<5x128xf32>
      %26 = vector.shape_cast %22 : vector<5x128xf32> to vector<1x5x128xf32>
      tpu.vector_store %arg8[%23, %c0_16, %c0_17], %26 {strides = array<i32>} : memref<9x5x128xf32, #tpu.memory_space<vmem>>, vector<1x5x128xf32>,
    }
    %c9_i32_5 = arith.constant 9 : i32
    %c0_i32_6 = arith.constant 0 : i32
    %5 = arith.cmpi eq, %arg1, %c0_i32_6 : i32
    %6 = arith.extui %5 : i1 to i32
    %c0_i32_7 = arith.constant 0 : i32
    %7 = arith.cmpi ne, %6, %c0_i32_7 : i32
    scf.if %7 {
      %cst_11 = arith.constant 0.000000e+00 : f32
      %9 = vector.broadcast %cst_11 : f32 to vector<5x128xf32>
      %c0_12 = arith.constant 0 : index
      %c0_13 = arith.constant 0 : index
      %c0_14 = arith.constant 0 : index
      %10 = vector.load %arg8[%c0_12, %c0_13, %c0_14] : memref<9x5x128xf32, #tpu.memory_space<vmem>>, vector<1x5x128xf32>
      %11 = vector.shape_cast %10 : vector<1x5x128xf32> to vector<5x128xf32>
      %12 = vector.shape_cast %9 : vector<5x128xf32> to vector<1x5x128xf32>
      tpu.vector_store %arg8[%c0_12, %c0_13, %c0_14], %12 {strides = array<i32>} : memref<9x5x128xf32, #tpu.memory_space<vmem>>, vector<1x5x128xf32>,
    } else {
    }
    %c0_i32_8 = arith.constant 0 : i32
    %c2_i32 = arith.constant 2 : i32
    %8 = arith.addi %c0_i32_8, %c2_i32 : i32
    %c1_i32_9 = arith.constant 1 : i32
    scf.for %arg9 = %c0_i32_8 to %8 step %c1_i32_9  : i32 {
      %cst_11 = arith.constant 0.000000e+00 : f32
      %9 = vector.broadcast %cst_11 : f32 to vector<4x64xf32>
      %cst_12 = arith.constant 0.000000e+00 : f32
      %10 = vector.broadcast %cst_12 : f32 to vector<4x64xf32>
      %c4_i32 = arith.constant 4 : i32
      %11 = arith.muli %c4_i32, %arg9 : i32
      %c0_i32_13 = arith.constant 0 : i32
      %12 = arith.addi %11, %c0_i32_13 : i32
      %13 = arith.index_cast %12 : i32 to index
      %c0_14 = arith.constant 0 : index
      %c0_15 = arith.constant 0 : index
      %14 = vector.load %arg8[%13, %c0_14, %c0_15] : memref<9x5x128xf32, #tpu.memory_space<vmem>>, vector<1x5x128xf32>
      %15 = vector.shape_cast %14 : vector<1x5x128xf32> to vector<5x128xf32>
      %c4_i32_16 = arith.constant 4 : i32
      %16 = arith.muli %c4_i32_16, %arg9 : i32
      %c2_i32_17 = arith.constant 2 : i32
      %17 = arith.addi %16, %c2_i32_17 : i32
      %c0_i32_18 = arith.constant 0 : i32
      %18 = arith.addi %17, %c0_i32_18 : i32
      %19 = arith.index_cast %18 : i32 to index
      %c0_19 = arith.constant 0 : index
      %c0_20 = arith.constant 0 : index
      %20 = vector.load %arg8[%19, %c0_19, %c0_20] : memref<9x5x128xf32, #tpu.memory_space<vmem>>, vector<1x5x128xf32>
      %21 = vector.shape_cast %20 : vector<1x5x128xf32> to vector<5x128xf32>
      %c0_21 = arith.constant 0 : index
      %c0_22 = arith.constant 0 : index
      %22 = vector.load %arg5[%c0_21, %c0_22] : memref<576x64xbf16, #tpu.memory_space<vmem>>, vector<64x64xbf16>
      %23 = vector.extract_strided_slice %15 {offsets = [0, 0], sizes = [4, 64], strides = [1, 1]} : vector<5x128xf32> to vector<4x64xf32>
      %24 = arith.truncf %23 : vector<4x64xf32> to vector<4x64xbf16>
      %25 = vector.extract_strided_slice %21 {offsets = [0, 0], sizes = [4, 64], strides = [1, 1]} : vector<5x128xf32> to vector<4x64xf32>
      %26 = arith.truncf %25 : vector<4x64xf32> to vector<4x64xbf16>
      %cst_23 = arith.constant dense<0.000000e+00> : vector<4x64xf32>
      %27 = tpu.matmul %24, %22, %cst_23 {dimension_numbers = #tpu.dot_dimension_numbers<[1], [0], [0], [1], [0, 0, 1, 1], [], []>} : vector<4x64xbf16>, vector<64x64xbf16>, vector<4x64xf32> -> vector<4x64xf32>
      %28 = arith.addf %9, %27 : vector<4x64xf32>
      %cst_24 = arith.constant dense<0.000000e+00> : vector<4x64xf32>
      %29 = tpu.matmul %26, %22, %cst_24 {dimension_numbers = #tpu.dot_dimension_numbers<[1], [0], [0], [1], [0, 0, 1, 1], [], []>} : vector<4x64xbf16>, vector<64x64xbf16>, vector<4x64xf32> -> vector<4x64xf32>
      %30 = arith.addf %10, %29 : vector<4x64xf32>
      %c64 = arith.constant 64 : index
      %c0_25 = arith.constant 0 : index
      %31 = vector.load %arg5[%c64, %c0_25] : memref<576x64xbf16, #tpu.memory_space<vmem>>, vector<64x64xbf16>
      %32 = vector.extract_strided_slice %15 {offsets = [0, 64], sizes = [4, 64], strides = [1, 1]} : vector<5x128xf32> to vector<4x64xf32>
      %33 = arith.truncf %32 : vector<4x64xf32> to vector<4x64xbf16>
      %34 = vector.extract_strided_slice %21 {offsets = [0, 64], sizes = [4, 64], strides = [1, 1]} : vector<5x128xf32> to vector<4x64xf32>
      %35 = arith.truncf %34 : vector<4x64xf32> to vector<4x64xbf16>
      %cst_26 = arith.constant dense<0.000000e+00> : vector<4x64xf32>
      %36 = tpu.matmul %33, %31, %cst_26 {dimension_numbers = #tpu.dot_dimension_numbers<[1], [0], [0], [1], [0, 0, 1, 1], [], []>} : vector<4x64xbf16>, vector<64x64xbf16>, vector<4x64xf32> -> vector<4x64xf32>
      %37 = arith.addf %28, %36 : vector<4x64xf32>
      %cst_27 = arith.constant dense<0.000000e+00> : vector<4x64xf32>
      %38 = tpu.matmul %35, %31, %cst_27 {dimension_numbers = #tpu.dot_dimension_numbers<[1], [0], [0], [1], [0, 0, 1, 1], [], []>} : vector<4x64xbf16>, vector<64x64xbf16>, vector<4x64xf32> -> vector<4x64xf32>
      %39 = arith.addf %30, %38 : vector<4x64xf32>
      %c128 = arith.constant 128 : index
      %c0_28 = arith.constant 0 : index
      %40 = vector.load %arg5[%c128, %c0_28] : memref<576x64xbf16, #tpu.memory_space<vmem>>, vector<64x64xbf16>
      %41 = vector.extract_strided_slice %15 {offsets = [1, 0], sizes = [4, 64], strides = [1, 1]} : vector<5x128xf32> to vector<4x64xf32>
      %42 = arith.truncf %41 : vector<4x64xf32> to vector<4x64xbf16>
      %43 = vector.extract_strided_slice %21 {offsets = [1, 0], sizes = [4, 64], strides = [1, 1]} : vector<5x128xf32> to vector<4x64xf32>
      %44 = arith.truncf %43 : vector<4x64xf32> to vector<4x64xbf16>
      %cst_29 = arith.constant dense<0.000000e+00> : vector<4x64xf32>
      %45 = tpu.matmul %42, %40, %cst_29 {dimension_numbers = #tpu.dot_dimension_numbers<[1], [0], [0], [1], [0, 0, 1, 1], [], []>} : vector<4x64xbf16>, vector<64x64xbf16>, vector<4x64xf32> -> vector<4x64xf32>
      %46 = arith.addf %37, %45 : vector<4x64xf32>
      %cst_30 = arith.constant dense<0.000000e+00> : vector<4x64xf32>
      %47 = tpu.matmul %44, %40, %cst_30 {dimension_numbers = #tpu.dot_dimension_numbers<[1], [0], [0], [1], [0, 0, 1, 1], [], []>} : vector<4x64xbf16>, vector<64x64xbf16>, vector<4x64xf32> -> vector<4x64xf32>
      %48 = arith.addf %39, %47 : vector<4x64xf32>
      %c4_i32_31 = arith.constant 4 : i32
      %49 = arith.muli %c4_i32_31, %arg9 : i32
      %c1_i32_32 = arith.constant 1 : i32
      %50 = arith.addi %49, %c1_i32_32 : i32
      %51 = arith.index_cast %50 : i32 to index
      %c0_33 = arith.constant 0 : index
      %c0_34 = arith.constant 0 : index
      %52 = vector.load %arg8[%51, %c0_33, %c0_34] : memref<9x5x128xf32, #tpu.memory_space<vmem>>, vector<1x5x128xf32>
      %53 = vector.shape_cast %52 : vector<1x5x128xf32> to vector<5x128xf32>
      %c4_i32_35 = arith.constant 4 : i32
      %54 = arith.muli %c4_i32_35, %arg9 : i32
      %c2_i32_36 = arith.constant 2 : i32
      %55 = arith.addi %54, %c2_i32_36 : i32
      %c1_i32_37 = arith.constant 1 : i32
      %56 = arith.addi %55, %c1_i32_37 : i32
      %57 = arith.index_cast %56 : i32 to index
      %c0_38 = arith.constant 0 : index
      %c0_39 = arith.constant 0 : index
      %58 = vector.load %arg8[%57, %c0_38, %c0_39] : memref<9x5x128xf32, #tpu.memory_space<vmem>>, vector<1x5x128xf32>
      %59 = vector.shape_cast %58 : vector<1x5x128xf32> to vector<5x128xf32>
      %c192 = arith.constant 192 : index
      %c0_40 = arith.constant 0 : index
      %60 = vector.load %arg5[%c192, %c0_40] : memref<576x64xbf16, #tpu.memory_space<vmem>>, vector<64x64xbf16>
      %61 = vector.extract_strided_slice %53 {offsets = [0, 0], sizes = [4, 64], strides = [1, 1]} : vector<5x128xf32> to vector<4x64xf32>
      %62 = arith.truncf %61 : vector<4x64xf32> to vector<4x64xbf16>
      %63 = vector.extract_strided_slice %59 {offsets = [0, 0], sizes = [4, 64], strides = [1, 1]} : vector<5x128xf32> to vector<4x64xf32>
      %64 = arith.truncf %63 : vector<4x64xf32> to vector<4x64xbf16>
      %cst_41 = arith.constant dense<0.000000e+00> : vector<4x64xf32>
      %65 = tpu.matmul %62, %60, %cst_41 {dimension_numbers = #tpu.dot_dimension_numbers<[1], [0], [0], [1], [0, 0, 1, 1], [], []>} : vector<4x64xbf16>, vector<64x64xbf16>, vector<4x64xf32> -> vector<4x64xf32>
      %66 = arith.addf %46, %65 : vector<4x64xf32>
      %cst_42 = arith.constant dense<0.000000e+00> : vector<4x64xf32>
      %67 = tpu.matmul %64, %60, %cst_42 {dimension_numbers = #tpu.dot_dimension_numbers<[1], [0], [0], [1], [0, 0, 1, 1], [], []>} : vector<4x64xbf16>, vector<64x64xbf16>, vector<4x64xf32> -> vector<4x64xf32>
      %68 = arith.addf %48, %67 : vector<4x64xf32>
      %c256 = arith.constant 256 : index
      %c0_43 = arith.constant 0 : index
      %69 = vector.load %arg5[%c256, %c0_43] : memref<576x64xbf16, #tpu.memory_space<vmem>>, vector<64x64xbf16>
      %70 = vector.extract_strided_slice %53 {offsets = [0, 64], sizes = [4, 64], strides = [1, 1]} : vector<5x128xf32> to vector<4x64xf32>
      %71 = arith.truncf %70 : vector<4x64xf32> to vector<4x64xbf16>
      %72 = vector.extract_strided_slice %59 {offsets = [0, 64], sizes = [4, 64], strides = [1, 1]} : vector<5x128xf32> to vector<4x64xf32>
      %73 = arith.truncf %72 : vector<4x64xf32> to vector<4x64xbf16>
      %cst_44 = arith.constant dense<0.000000e+00> : vector<4x64xf32>
      %74 = tpu.matmul %71, %69, %cst_44 {dimension_numbers = #tpu.dot_dimension_numbers<[1], [0], [0], [1], [0, 0, 1, 1], [], []>} : vector<4x64xbf16>, vector<64x64xbf16>, vector<4x64xf32> -> vector<4x64xf32>
      %75 = arith.addf %66, %74 : vector<4x64xf32>
      %cst_45 = arith.constant dense<0.000000e+00> : vector<4x64xf32>
      %76 = tpu.matmul %73, %69, %cst_45 {dimension_numbers = #tpu.dot_dimension_numbers<[1], [0], [0], [1], [0, 0, 1, 1], [], []>} : vector<4x64xbf16>, vector<64x64xbf16>, vector<4x64xf32> -> vector<4x64xf32>
      %77 = arith.addf %68, %76 : vector<4x64xf32>
      %c320 = arith.constant 320 : index
      %c0_46 = arith.constant 0 : index
      %78 = vector.load %arg5[%c320, %c0_46] : memref<576x64xbf16, #tpu.memory_space<vmem>>, vector<64x64xbf16>
      %79 = vector.extract_strided_slice %53 {offsets = [1, 0], sizes = [4, 64], strides = [1, 1]} : vector<5x128xf32> to vector<4x64xf32>
      %80 = arith.truncf %79 : vector<4x64xf32> to vector<4x64xbf16>
      %81 = vector.extract_strided_slice %59 {offsets = [1, 0], sizes = [4, 64], strides = [1, 1]} : vector<5x128xf32> to vector<4x64xf32>
      %82 = arith.truncf %81 : vector<4x64xf32> to vector<4x64xbf16>
      %cst_47 = arith.constant dense<0.000000e+00> : vector<4x64xf32>
      %83 = tpu.matmul %80, %78, %cst_47 {dimension_numbers = #tpu.dot_dimension_numbers<[1], [0], [0], [1], [0, 0, 1, 1], [], []>} : vector<4x64xbf16>, vector<64x64xbf16>, vector<4x64xf32> -> vector<4x64xf32>
      %84 = arith.addf %75, %83 : vector<4x64xf32>
      %cst_48 = arith.constant dense<0.000000e+00> : vector<4x64xf32>
      %85 = tpu.matmul %82, %78, %cst_48 {dimension_numbers = #tpu.dot_dimension_numbers<[1], [0], [0], [1], [0, 0, 1, 1], [], []>} : vector<4x64xbf16>, vector<64x64xbf16>, vector<4x64xf32> -> vector<4x64xf32>
      %86 = arith.addf %77, %85 : vector<4x64xf32>
      %c4_i32_49 = arith.constant 4 : i32
      %87 = arith.muli %c4_i32_49, %arg9 : i32
      %c2_i32_50 = arith.constant 2 : i32
      %88 = arith.addi %87, %c2_i32_50 : i32
      %89 = arith.index_cast %88 : i32 to index
      %c0_51 = arith.constant 0 : index
      %c0_52 = arith.constant 0 : index
      %90 = vector.load %arg8[%89, %c0_51, %c0_52] : memref<9x5x128xf32, #tpu.memory_space<vmem>>, vector<1x5x128xf32>
      %91 = vector.shape_cast %90 : vector<1x5x128xf32> to vector<5x128xf32>
      %c4_i32_53 = arith.constant 4 : i32
      %92 = arith.muli %c4_i32_53, %arg9 : i32
      %c2_i32_54 = arith.constant 2 : i32
      %93 = arith.addi %92, %c2_i32_54 : i32
      %c2_i32_55 = arith.constant 2 : i32
      %94 = arith.addi %93, %c2_i32_55 : i32
      %95 = arith.index_cast %94 : i32 to index
      %c0_56 = arith.constant 0 : index
      %c0_57 = arith.constant 0 : index
      %96 = vector.load %arg8[%95, %c0_56, %c0_57] : memref<9x5x128xf32, #tpu.memory_space<vmem>>, vector<1x5x128xf32>
      %97 = vector.shape_cast %96 : vector<1x5x128xf32> to vector<5x128xf32>
      %c384 = arith.constant 384 : index
      %c0_58 = arith.constant 0 : index
      %98 = vector.load %arg5[%c384, %c0_58] : memref<576x64xbf16, #tpu.memory_space<vmem>>, vector<64x64xbf16>
      %99 = vector.extract_strided_slice %91 {offsets = [0, 0], sizes = [4, 64], strides = [1, 1]} : vector<5x128xf32> to vector<4x64xf32>
      %100 = arith.truncf %99 : vector<4x64xf32> to vector<4x64xbf16>
      %101 = vector.extract_strided_slice %97 {offsets = [0, 0], sizes = [4, 64], strides = [1, 1]} : vector<5x128xf32> to vector<4x64xf32>
      %102 = arith.truncf %101 : vector<4x64xf32> to vector<4x64xbf16>
      %cst_59 = arith.constant dense<0.000000e+00> : vector<4x64xf32>
      %103 = tpu.matmul %100, %98, %cst_59 {dimension_numbers = #tpu.dot_dimension_numbers<[1], [0], [0], [1], [0, 0, 1, 1], [], []>} : vector<4x64xbf16>, vector<64x64xbf16>, vector<4x64xf32> -> vector<4x64xf32>
      %104 = arith.addf %84, %103 : vector<4x64xf32>
      %cst_60 = arith.constant dense<0.000000e+00> : vector<4x64xf32>
      %105 = tpu.matmul %102, %98, %cst_60 {dimension_numbers = #tpu.dot_dimension_numbers<[1], [0], [0], [1], [0, 0, 1, 1], [], []>} : vector<4x64xbf16>, vector<64x64xbf16>, vector<4x64xf32> -> vector<4x64xf32>
      %106 = arith.addf %86, %105 : vector<4x64xf32>
      %c448 = arith.constant 448 : index
      %c0_61 = arith.constant 0 : index
      %107 = vector.load %arg5[%c448, %c0_61] : memref<576x64xbf16, #tpu.memory_space<vmem>>, vector<64x64xbf16>
      %108 = vector.extract_strided_slice %91 {offsets = [0, 64], sizes = [4, 64], strides = [1, 1]} : vector<5x128xf32> to vector<4x64xf32>
      %109 = arith.truncf %108 : vector<4x64xf32> to vector<4x64xbf16>
      %110 = vector.extract_strided_slice %97 {offsets = [0, 64], sizes = [4, 64], strides = [1, 1]} : vector<5x128xf32> to vector<4x64xf32>
      %111 = arith.truncf %110 : vector<4x64xf32> to vector<4x64xbf16>
      %cst_62 = arith.constant dense<0.000000e+00> : vector<4x64xf32>
      %112 = tpu.matmul %109, %107, %cst_62 {dimension_numbers = #tpu.dot_dimension_numbers<[1], [0], [0], [1], [0, 0, 1, 1], [], []>} : vector<4x64xbf16>, vector<64x64xbf16>, vector<4x64xf32> -> vector<4x64xf32>
      %113 = arith.addf %104, %112 : vector<4x64xf32>
      %cst_63 = arith.constant dense<0.000000e+00> : vector<4x64xf32>
      %114 = tpu.matmul %111, %107, %cst_63 {dimension_numbers = #tpu.dot_dimension_numbers<[1], [0], [0], [1], [0, 0, 1, 1], [], []>} : vector<4x64xbf16>, vector<64x64xbf16>, vector<4x64xf32> -> vector<4x64xf32>
      %115 = arith.addf %106, %114 : vector<4x64xf32>
      %c512 = arith.constant 512 : index
      %c0_64 = arith.constant 0 : index
      %116 = vector.load %arg5[%c512, %c0_64] : memref<576x64xbf16, #tpu.memory_space<vmem>>, vector<64x64xbf16>
      %117 = vector.extract_strided_slice %91 {offsets = [1, 0], sizes = [4, 64], strides = [1, 1]} : vector<5x128xf32> to vector<4x64xf32>
      %118 = arith.truncf %117 : vector<4x64xf32> to vector<4x64xbf16>
      %119 = vector.extract_strided_slice %97 {offsets = [1, 0], sizes = [4, 64], strides = [1, 1]} : vector<5x128xf32> to vector<4x64xf32>
      %120 = arith.truncf %119 : vector<4x64xf32> to vector<4x64xbf16>
      %cst_65 = arith.constant dense<0.000000e+00> : vector<4x64xf32>
      %121 = tpu.matmul %118, %116, %cst_65 {dimension_numbers = #tpu.dot_dimension_numbers<[1], [0], [0], [1], [0, 0, 1, 1], [], []>} : vector<4x64xbf16>, vector<64x64xbf16>, vector<4x64xf32> -> vector<4x64xf32>
      %122 = arith.addf %113, %121 : vector<4x64xf32>
      %cst_66 = arith.constant dense<0.000000e+00> : vector<4x64xf32>
      %123 = tpu.matmul %120, %116, %cst_66 {dimension_numbers = #tpu.dot_dimension_numbers<[1], [0], [0], [1], [0, 0, 1, 1], [], []>} : vector<4x64xbf16>, vector<64x64xbf16>, vector<4x64xf32> -> vector<4x64xf32>
      %124 = arith.addf %115, %123 : vector<4x64xf32>
      %125 = vector.broadcast %2 : vector<1x64xf32> to vector<4x64xf32>
      %126 = arith.addf %122, %125 : vector<4x64xf32>
      %cst_67 = arith.constant 0.000000e+00 : f32
      %127 = vector.broadcast %cst_67 : f32 to vector<4x64xf32>
      %128 = arith.maximumf %126, %127 : vector<4x64xf32>
      %129 = vector.broadcast %2 : vector<1x64xf32> to vector<4x64xf32>
      %130 = arith.addf %124, %129 : vector<4x64xf32>
      %cst_68 = arith.constant 0.000000e+00 : f32
      %131 = vector.broadcast %cst_68 : f32 to vector<4x64xf32>
      %132 = arith.maximumf %130, %131 : vector<4x64xf32>
      %133 = tpu.concatenate %128, %132 in 1 : vector<4x64xf32>, vector<4x64xf32> -> vector<4x128xf32>
      %c0_69 = arith.constant 0 : index
      %134 = arith.index_cast %arg9 : i32 to index
      %c0_70 = arith.constant 0 : index
      %c0_71 = arith.constant 0 : index
      %135 = vector.load %arg7[%c0_69, %134, %c0_70, %c0_71] : memref<1x2x4x128xf32, #tpu.memory_space<vmem>>, vector<1x1x4x128xf32>
      %136 = vector.shape_cast %135 : vector<1x1x4x128xf32> to vector<4x128xf32>
      %137 = vector.shape_cast %133 : vector<4x128xf32> to vector<1x1x4x128xf32>
      tpu.vector_store %arg7[%c0_69, %134, %c0_70, %c0_71], %137 {strides = array<i32>} : memref<1x2x4x128xf32, #tpu.memory_space<vmem>>, vector<1x1x4x128xf32>,
    }
    %c2_i32_10 = arith.constant 2 : i32
    return
  }
  func.func @transform_0(%arg0: i32, %arg1: i32) -> (i32, i32, i32, i32) {
    %c1_i32 = arith.constant 1 : i32
    %0 = arith.muli %arg0, %c1_i32 : i32
    %1 = arith.addi %0, %arg1 : i32
    %c0_i32 = arith.constant 0 : i32
    %c0_i32_0 = arith.constant 0 : i32
    %c0_i32_1 = arith.constant 0 : i32
    %c0_i32_2 = arith.constant 0 : i32
    return %1, %c0_i32, %c0_i32_0, %c0_i32_1 : i32, i32, i32, i32
  }
  func.func @transform_1(%arg0: i32, %arg1: i32) -> (i32, i32) {
    %c0_i32 = arith.constant 0 : i32
    %c0_i32_0 = arith.constant 0 : i32
    %c0_i32_1 = arith.constant 0 : i32
    return %c0_i32, %c0_i32_0 : i32, i32
  }
  func.func @transform_2(%arg0: i32, %arg1: i32) -> (i32, i32) {
    %c0_i32 = arith.constant 0 : i32
    %c0_i32_0 = arith.constant 0 : i32
    %c0_i32_1 = arith.constant 0 : i32
    return %c0_i32, %c0_i32_0 : i32, i32
  }
  func.func @transform_3(%arg0: i32, %arg1: i32) -> (i32, i32) {
    %c0_i32 = arith.constant 0 : i32
    %c0_i32_0 = arith.constant 0 : i32
    %c0_i32_1 = arith.constant 0 : i32
    return %c0_i32, %c0_i32_0 : i32, i32
  }
  func.func @transform_4(%arg0: i32, %arg1: i32) -> (i32, i32) {
    %c0_i32 = arith.constant 0 : i32
    %c0_i32_0 = arith.constant 0 : i32
    %c0_i32_1 = arith.constant 0 : i32
    return %c0_i32, %c0_i32_0 : i32, i32
  }
  func.func @transform_5(%arg0: i32, %arg1: i32) -> (i32, i32, i32, i32) {
    %c0_i32 = arith.constant 0 : i32
    %c0_i32_0 = arith.constant 0 : i32
    %c0_i32_1 = arith.constant 0 : i32
    return %arg0, %arg1, %c0_i32, %c0_i32_0 : i32, i32, i32, i32
  }
}

</mosaic_0001>

<bundles_post_ra>
// kernel: stem_forward.1
= control target key start
LH: loop header
LB: loop body
LE: loop exit
PB: predicated region body
PF: predicated region fallthrough
CT: control target
= control target key end

     0   :  { %s2268_s18 = smov 0   ;;  %s2270_s19 = smov 0   ;;  %s2762_s0 = inlined_call_operand.vmem [shape: bf16[2,9,4,64], index: 0, kind: input, shape index: {}]   ;;  %s2763_s1 = inlined_call_operand.vmem [shape: bf16[32,64], index: 1, kind: input, shape index: {}]   ;;  %s2764_s2 = inlined_call_operand.vmem [shape: f32[1,64], index: 2, kind: input, shape index: {}]   ;;  %s2765_s3 = inlined_call_operand.vmem [shape: bf16[576,64], index: 3, kind: input, shape index: {}]   ;;  %s2766_s4 = inlined_call_operand.vmem [shape: f32[1,64], index: 4, kind: input, shape index: {}]   ;;  %s2767_s5 = inlined_call_operand.vmem [shape: f32[2,2,4,128], index: 5, kind: output, shape index: {}]  }
   0x1   :  { %s2272_s20 = smov 0  }
   0x2 LB: > { %s27_s21 = sadd.s32 1, %s2215_s19  ;;  %p1687_p0 = scmp.ge.s32.totalorder %s2219_s20, 1  ;;  %s2219_s20 = sphi %s2272_s20, %s15_s20   ;;  %s2215_s19 = sphi %s2270_s19, %s2769_s19   ;;  %s2211_s18 = sphi %s2268_s18, %s2768_s18  }
   0x3   : > { %p29_p1 = scmp.ge.s32.totalorder %s27_s21, 2  ;;  %p205_p2 = scmp.lt.s32.totalorder %s2219_s20, 3 }
   0x5   : > { %s2771_s21 = smov (%p29_p1, %s27_s21), 0  ;;  %p206_p3 = pnand %p1687_p0, %p205_p2 }
   0x6   : > { %p239_p4 = scmp.lt.s32.totalorder (!%p206_p3), %s2211_s18, 1  ;;  %v2289_v0 = vld [vmem:[%s2763_s1] sm:$0xf] (!%p206_p3)  ;;  %v2294_v1 = vld [vmem:[%s2763_s1 + $0x4] sm:$0xf] (!%p206_p3)  ;;  %s2326_s17 = smov (!%p206_p3), 0  }
   0x7   : > { %209 = sbr.rel (%p206_p3) target bundleno = 890 (0x37a), region = 40  ;;  %v2299_v2 = vld [vmem:[%s2763_s1 + $0x8] sm:$0xf] (!%p206_p3)  ;;  %v2304_v3 = vld [vmem:[%s2763_s1 + $0xc] sm:$0xf] (!%p206_p3) }
   0x8   : > { %v2309_v4 = vld [vmem:[%s2764_s2] ss:$0 sm:$0xff] (!%p206_p3) }
   0x9   : > { %v2314_v5 = vld [vmem:[%s2766_s4] ss:$0 sm:$0xff] (!%p206_p3) }
   0xe   : > { %s2773_s18 = smov (!%p239_p4, %s2211_s18), 1 }
   0xf   : > { %s2103_s9 = smul.u32 18, %s2773_s18  ;;  %s1769_s10 = sshll.u32 %s2773_s18, 3 }
  0x10   : > { %s2319_s13 = scalar_lea.vmem %s2767_s5, %s1769_s10 }
  0x11   : > { %s2324_s16 = scalar_lea.vmem %s2762_s0, %s2103_s9 }
  0x12 LB: >> { %v1693_v6 = vcombine.low %v2289_v0, %v2294_v1  ;;  %v2229_v7 = vmov 0.0   ;;  %vm2230_vm0 = vmmov 0   ;;  %v337_v8 = vlaneseq  ;;  %s1691_s18 = sshll.u32 %s2223_s17, 1  ;;  %s2232_s23 = smov 96   ;;  %s2223_s17 = sphi %s2326_s17, %s267_s17  }
  0x13   : >> { %1871 = vmatprep.subr.bf16.mxu0 %v2229_v7  ;;  %1875 = vmatprep.mubr.msk.bf16.mxu0 %vm2230_vm0, %v2229_v7  ;;  %v1694_v9 = vcombine.low %v2299_v2, %v2304_v3  ;;  %v2231_v10 = vmov 1983009808   ;;  %s269_s22 = scalar_lea.vmem %s2324_s16, %s1691_s18  ;;  %vm289_vm1 = vcmask 261120   ;;  %vm391_vm2 = vcmask 1043456   ;;  %s2233_s24 = smov 64  }
  0x14   : >> { %1872 = vmatpush3.bf16.msra.mxu0 %v1693_v6  ;;  %v335_v11 = vunpack.c.l.s4 %v2231_v10  ;;  %1879 = vmatprep.subr.bf16.mxu1 %v2229_v7  ;;  %v338_v12 = vshrl.u32 %v337_v8, 7  ;;  %v270_v14 = vld [vmem:[%s269_s22] sm:$0x3]  ;;  %s1697_s25 = sshll.u32 %s2223_s17, 3  ;;  %vm389_vm3 = vcmask 1040384   ;;  %vm397_vm4 = vcmask 523264  }
  0x15   : >> { %1873 = vmatprep.subr.bf16.mxu0 %v2229_v7  ;;  %1880 = vmatpush3.bf16.msra.mxu1 %v1693_v6  ;;  %s400_s26 = scalar_lea.vmem [#allocation2], %s1697_s25  ;;  %s267_s17 = sadd.s32 1, %s2223_s17  }
  0x16   : >> { %v336_v13 = vunpack.c.0.s8 %v335_v11  ;;  %1881 = vmatprep.subr.bf16.mxu1 %v2229_v7  ;;  %1883 = vmatprep.mubr.msk.bf16.mxu1 %vm2230_vm0, %v2229_v7  ;;  %p264_p5 = scmp.ge.s32.totalorder %s267_s17, 9  }
  0x17   : > { %v2234_v33 = vmov (%p264_p5), 0.0   ;;  %s2344_s27 = smov (%p264_p5), 0  }
  0x18   : >> { %1874 = vmatpush3.bf16.msra.mxu0 %v1694_v9  ;;  %v339_v15 = vsub.s32 %v336_v13, %v338_v12 }
  0x19   : >> { %1882 = vmatpush3.bf16.msra.mxu1 %v1694_v9 }
  0x1a   : >> { %v340_v16 = vrot.slane %v270_v14, %v339_v15 }
  0x1b   : >> { %1876 = vmatmul.mubr.msk.bf16.vlgmr.msra.gmra.mrb[0].mxu0 %vm289_vm1, %v270_v14 }
  0x1c   : >> { %341 = vrot.lane.b32.xlu0 %v340_v16, %s2232_s23 }
  0x8e   : >> { %v342_v17 = vpop.permute.xlu0 %341 }
  0x8f   : >> { %1884 = vmatmul.mubr.msk.bf16.vlgmr.msra.gmra.mrb[0].mxu1 %vm289_vm1, %v342_v17 }
  0xee   : >> { %v327_v18 = vpop.f32.mrb[0].mxu0 }
  0xef   : >> { %v328_v19 = vadd.f32 %v2309_v4, %v327_v18  ;;  %v1877_v20 = vpop.f32.mrb[1].mxu0 }
  0xf0   : >> { %v330_v21 = vpop.f32.mrb[2].mxu0 }
  0xf1   : >> { %v1878_v22 = vpop.f32.mrb[3].mxu0  ;;  %v392_v23 = vsel %vm391_vm2, %v328_v19, 0.0 }
  0xf2   : >> { %394 = vrot.lane.b32.xlu0 %v392_v23, %s2233_s24 }
 0x162   : >> { %v380_v24 = vpop.f32.mrb[0].mxu1 }
 0x163   : >> { %v381_v25 = vadd.f32 %v2309_v4, %v380_v24  ;;  %v1885_v26 = vpop.f32.mrb[1].mxu1  ;;  %266 = sbr.rel (!%p264_p5) target bundleno = 18 (0x12), region = 96 }
 0x164   : >> { %v383_v27 = vpop.f32.mrb[2].mxu1  ;;  %v395_v30 = vpop.permute.xlu0 %394 }
 0x165   : >> { %v387_v28 = vrot.slane %v381_v25, 7  ;;  %v1886_v29 = vpop.f32.mrb[3].mxu1 }
 0x167   : >> { %v390_v31 = vsel %vm389_vm3, 0.0, %v387_v28 }
 0x168   : >> { %v398_v32 = vsel %vm397_vm4, %v390_v31, %v395_v30 }
 0x169   : >> { %401 = vst [vmem:[%s400_s26] sm:$0x1f] %v398_v32 }
 0x16a   : > { %406 = vst [vmem:[#allocation2] sm:$0x1f] %v2234_v33 }
 0x16b LB: >> { %v2235_v34 = vmov 0.0   ;;  %v2153_v35 = vld [vmem:[%s2765_s3] sm:$0xff]   ;;  %s1770_s30 = sshll.u32 %s2227_s27, 5  ;;  %vm2236_vm5 = vmmov 0   ;;  %v2154_v36 = vld [vmem:[%s2765_s3 + $0x8] sm:$0xff]   ;;  %v2155_v43 = vld [vmem:[%s2765_s3 + $0x10] sm:$0xff]   ;;  %s2227_s27 = sphi %s2344_s27, %s412_s27  }
 0x16c   : >> { %1899 = vmatprep.subr.bf16.mxu1 %v2235_v34  ;;  %1887 = vmatprep.subr.bf16.mxu0 %v2235_v34  ;;  %s415_s8 = scalar_lea.vmem [#allocation2], %s1770_s30  ;;  %s2237_s11 = smov 64   ;;  %v2156_v48 = vld [vmem:[%s2765_s3 + $0x18] sm:$0xff]   ;;  %v2394_v49 = vld [vmem:[%s2765_s3 + $0x20] sm:$0xff]   ;;  %v2401_v50 = vld [vmem:[%s2765_s3 + $0x28] sm:$0xff]  }
 0x16d   : >> { %1907 = vmatprep.mubr.msk.bf16.mxu1 %vm2236_vm5, %v2235_v34  ;;  %1895 = vmatprep.mubr.msk.bf16.mxu0 %vm2236_vm5, %v2235_v34  ;;  %v2413_v51 = vld [vmem:[%s2765_s3 + $0x30] sm:$0xff]   ;;  %v2421_v52 = vld [vmem:[%s2765_s3 + $0x38] sm:$0xff]   ;;  %v2430_v53 = vld [vmem:[%s2765_s3 + $0x40] sm:$0xff]  }
 0x16e   : >> { %1900 = vmatpush3.bf16.msra.mxu1 %v2153_v35  ;;  %1888 = vmatpush3.bf16.msra.mxu0 %v2394_v49  ;;  %v2439_v54 = vld [vmem:[%s2765_s3 + $0x48] sm:$0xff]   ;;  %v2449_v56 = vld [vmem:[%s2765_s3 + $0x50] sm:$0xff]   ;;  %v2457_v59 = vld [vmem:[%s2765_s3 + $0x58] sm:$0xff]  }
 0x16f   : >> { %1901 = vmatprep.subr.bf16.mxu1 %v2235_v34  ;;  %1889 = vmatprep.subr.bf16.mxu0 %v2235_v34  ;;  %v2466_v61 = vld [vmem:[%s2765_s3 + $0x60] sm:$0xff]   ;;  %v2475_v62 = vld [vmem:[%s2765_s3 + $0x68] sm:$0xff]   ;;  %v2484_v63 = vld [vmem:[%s2765_s3 + $0x70] sm:$0xff]  }
 0x170   : >> { %v2491_v0 = vld [vmem:[%s2765_s3 + $0x78] sm:$0xff]   ;;  %v2498_v1 = vld [vmem:[%s2765_s3 + $0x80] sm:$0xff]   ;;  %v2507_v2 = vld [vmem:[%s2765_s3 + $0x88] sm:$0xff]  }
 0x171   : >> { %v416_v37 = vld [vmem:[%s415_s8] sm:$0x1f]  ;;  %v1726_v38 = vld [vmem:[%s415_s8 + $0x18] sm:$0x1f]  ;;  %v1702_v39 = vld [vmem:[%s415_s8 + $0x10] sm:$0x1f] }
 0x172   : >> { %v2363_v40 = vpack.c.bf16 %v416_v37, %v416_v37  ;;  %v2365_v41 = vpack.c.bf16 %v1702_v39, %v1702_v39  ;;  %v1747_v42 = vld [vmem:[%s415_s8 + $0x20] sm:$0x1f]  ;;  %v2372_v44 = vpack.c.bf16 %v1726_v38, %v1726_v38  ;;  %1902 = vmatpush3.bf16.msra.mxu1 %v2154_v36  ;;  %v1723_v46 = vld [vmem:[%s415_s8 + $0x8] sm:$0x1f]  ;;  %1890 = vmatpush3.bf16.msra.mxu0 %v2401_v50  ;;  %v2516_v3 = vld [vmem:[%s2765_s3 + $0x90] sm:$0xff]  }
 0x173   : >> { %v2376_v45 = vpack.c.bf16 %v1747_v42, %v1747_v42  ;;  %1903 = vmatprep.subr.bf16.mxu1 %v2235_v34  ;;  %v2383_v47 = vpack.c.bf16 %v1723_v46, %v1723_v46  ;;  %1891 = vmatprep.subr.bf16.mxu0 %v2235_v34  ;;  %v2523_v4 = vld [vmem:[%s2765_s3 + $0x98] sm:$0xff]   ;;  %v2533_v7 = vld [vmem:[%s2765_s3 + $0xa0] sm:$0xff]   ;;  %v2544_v9 = vld [vmem:[%s2765_s3 + $0xa8] sm:$0xff]  }
 0x174   : >> { %440 = vrot.lane.b32.xlu0 %v2363_v40, %s2237_s11  ;;  %578 = vrot.lane.b32.xlu1 %v2365_v41, %s2237_s11  ;;  %v750_v55 = vshll.u32 %v2365_v41, 16  ;;  %v748_v57 = vshrl.u32 %v2365_v41, 16  ;;  %v1138_v10 = vshll.u32 %v2372_v44, 16  ;;  %v2556_v11 = vld [vmem:[%s2765_s3 + $0xb0] sm:$0xff]   ;;  %v1136_v12 = vshrl.u32 %v2372_v44, 16  ;;  %v2568_v15 = vld [vmem:[%s2765_s3 + $0xb8] sm:$0xff]  }
 0x175   : >> { %v2579_v17 = vld [vmem:[%s2765_s3 + $0xc0] sm:$0xff]   ;;  %v676_v18 = vshll.u32 %v2363_v40, 16  ;;  %v2592_v19 = vld [vmem:[%s2765_s3 + $0xc8] sm:$0xff]   ;;  %v674_v20 = vshrl.u32 %v2363_v40, 16  ;;  %v2604_v22 = vld [vmem:[%s2765_s3 + $0xd0] sm:$0xff]   ;;  %v1503_v32 = vshll.u32 %v2376_v45, 16 }
 0x176   : >> { %1904 = vmatpush3.bf16.msra.mxu1 %v2155_v43  ;;  %1892 = vmatpush3.bf16.msra.mxu0 %v2413_v51  ;;  %v752_v58 = vrot.slane %v750_v55, 1  ;;  %v1140_v13 = vrot.slane %v1138_v10, 1  ;;  %v2613_v24 = vld [vmem:[%s2765_s3 + $0xd8] sm:$0xff]   ;;  %v2623_v25 = vld [vmem:[%s2765_s3 + $0xe0] sm:$0xff]   ;;  %v2636_v26 = vld [vmem:[%s2765_s3 + $0xe8] sm:$0xff]   ;;  %v1062_v42 = vshrl.u32 %v2383_v47, 16 }
 0x177   : >> { %1905 = vmatprep.subr.bf16.mxu1 %v2235_v34  ;;  %1893 = vmatprep.subr.bf16.mxu0 %v2235_v34  ;;  %v678_v21 = vrot.slane %v676_v18, 1  ;;  %v2647_v27 = vld [vmem:[%s2765_s3 + $0xf0] sm:$0xff]   ;;  %v2656_v28 = vld [vmem:[%s2765_s3 + $0xf8] sm:$0xff]   ;;  %v2667_v30 = vld [vmem:[%s2765_s3 + $0x100] sm:$0xff]  }
 0x178   : >> { %1008 = vrot.lane.b32.xlu0 %v2372_v44, %s2237_s11  ;;  %1382 = vrot.lane.b32.xlu1 %v2376_v45, %s2237_s11  ;;  %v2460_v60 = vor.u32 %v752_v58, %v748_v57  ;;  %v1141_v16 = vor.u32 %v1140_v13, %v1136_v12  ;;  %v2186_v31 = vld [vmem:[%s2765_s3 + $0x108] sm:$0xff]   ;;  %v2187_v33 = vld [vmem:[%s2765_s3 + $0x110] sm:$0xff]  }
 0x179   : >> { %v679_v23 = vor.u32 %v678_v21, %v674_v20  ;;  %v2188_v38 = vld [vmem:[%s2765_s3 + $0x118] sm:$0xff]  }
 0x17a   : >> { %1906 = vmatpush3.bf16.msra.mxu1 %v2156_v48  ;;  %1894 = vmatpush3.bf16.msra.mxu0 %v2421_v52 }
 0x17b   : >> { %1923 = vmatprep.subr.bf16.mxu1 %v2235_v34  ;;  %1911 = vmatprep.subr.bf16.mxu0 %v2235_v34 }
 0x17c   : >> { %937 = vrot.lane.b32.xlu0 %v2383_v47, %s2237_s11 }
 0x17d   : >> { %1908 = vmatmul.mubr.msk.bf16.vlgmr.msra.gmra.mrb[0].mxu1 %vm397_vm4, %v2363_v40  ;;  %v1064_v40 = vshll.u32 %v2383_v47, 16 }
 0x17e   : >> { %1924 = vmatpush3.bf16.msra.mxu1 %v2153_v35  ;;  %1931 = vmatprep.mubr.msk.bf16.mxu1 %vm2236_vm5, %v2235_v34  ;;  %v1501_v35 = vshrl.u32 %v2376_v45, 16 }
 0x17f   : >> { %1925 = vmatprep.subr.bf16.mxu1 %v2235_v34 }
 0x182   : >> { %1926 = vmatpush3.bf16.msra.mxu1 %v2154_v36  ;;  %v1505_v36 = vrot.slane %v1503_v32, 1 }
 0x183   : >> { %1927 = vmatprep.subr.bf16.mxu1 %v2235_v34 }
 0x184   : >> { %v1506_v39 = vor.u32 %v1505_v36, %v1501_v35 }
 0x186   : >> { %1928 = vmatpush3.bf16.msra.mxu1 %v2155_v43  ;;  %v1066_v43 = vrot.slane %v1064_v40, 1 }
 0x187   : >> { %1929 = vmatprep.subr.bf16.mxu1 %v2235_v34 }
 0x18a   : >> { %1930 = vmatpush3.bf16.msra.mxu1 %v2156_v48 }
 0x18b   : >> { %1947 = vmatprep.subr.bf16.mxu1 %v2235_v34 }
 0x18d   : >> { %1932 = vmatmul.mubr.msk.bf16.vlgmr.msra.gmra.mrb[4].mxu1 %vm397_vm4, %v2365_v41 }
 0x18e   : >> { %1948 = vmatpush3.bf16.msra.mxu1 %v2430_v53  ;;  %1955 = vmatprep.mubr.msk.bf16.mxu1 %vm2236_vm5, %v2235_v34 }
 0x18f   : >> { %1949 = vmatprep.subr.bf16.mxu1 %v2235_v34 }
 0x192   : >> { %1950 = vmatpush3.bf16.msra.mxu1 %v2439_v54 }
 0x193   : >> { %1951 = vmatprep.subr.bf16.mxu1 %v2235_v34 }
 0x196   : >> { %1952 = vmatpush3.bf16.msra.mxu1 %v2449_v56 }
 0x197   : >> { %1953 = vmatprep.subr.bf16.mxu1 %v2235_v34 }
 0x19a   : >> { %1954 = vmatpush3.bf16.msra.mxu1 %v2457_v59 }
 0x19b   : >> { %1971 = vmatprep.subr.bf16.mxu1 %v2235_v34 }
 0x19d   : >> { %1956 = vmatmul.mubr.msk.bf16.vlgmr.msra.gmra.mrb[8].mxu1 %vm397_vm4, %v2460_v60 }
 0x19e   : >> { %1972 = vmatpush3.bf16.msra.mxu1 %v2466_v61  ;;  %1979 = vmatprep.mubr.msk.bf16.mxu1 %vm2236_vm5, %v2235_v34 }
 0x19f   : >> { %1973 = vmatprep.subr.bf16.mxu1 %v2235_v34 }
 0x1a2   : >> { %1974 = vmatpush3.bf16.msra.mxu1 %v2475_v62 }
 0x1a3   : >> { %1975 = vmatprep.subr.bf16.mxu1 %v2235_v34 }
 0x1a6   : >> { %1976 = vmatpush3.bf16.msra.mxu1 %v2484_v63 }
 0x1a7   : >> { %1977 = vmatprep.subr.bf16.mxu1 %v2235_v34 }
 0x1aa   : >> { %1978 = vmatpush3.bf16.msra.mxu1 %v2491_v0 }
 0x1ab   : >> { %1995 = vmatprep.subr.bf16.mxu1 %v2235_v34 }
 0x1ad   : >> { %1980 = vmatmul.mubr.msk.bf16.vlgmr.msra.gmra.mrb[12].mxu1 %vm397_vm4, %v2372_v44  ;;  %v1067_v44 = vor.u32 %v1066_v43, %v1062_v42 }
 0x1ae   : >> { %1996 = vmatpush3.bf16.msra.mxu1 %v2498_v1  ;;  %2003 = vmatprep.mubr.msk.bf16.mxu1 %vm2236_vm5, %v2235_v34 }
 0x1af   : >> { %1997 = vmatprep.subr.bf16.mxu1 %v2235_v34 }
 0x1b2   : >> { %1998 = vmatpush3.bf16.msra.mxu1 %v2507_v2 }
 0x1b3   : >> { %1999 = vmatprep.subr.bf16.mxu1 %v2235_v34 }
 0x1b6   : >> { %2000 = vmatpush3.bf16.msra.mxu1 %v2516_v3 }
 0x1b7   : >> { %2001 = vmatprep.subr.bf16.mxu1 %v2235_v34 }
 0x1ba   : >> { %2002 = vmatpush3.bf16.msra.mxu1 %v2523_v4 }
 0x1bb   : >> { %2019 = vmatprep.subr.bf16.mxu1 %v2235_v34 }
 0x1e6   : >> { %v441_v6 = vpop.permute.xlu0 %440  ;;  %v2563_v14 = vpop.permute.xlu1 %578 }
 0x1e7   : >> { %1896 = vmatmul.mubr.msk.bf16.vlgmr.msra.gmra.mrb[0].mxu0 %vm397_vm4, %v441_v6 }
 0x1e8   : >> { %1912 = vmatpush3.bf16.msra.mxu0 %v2394_v49  ;;  %1919 = vmatprep.mubr.msk.bf16.mxu0 %vm2236_vm5, %v2235_v34 }
 0x1e9   : >> { %1913 = vmatprep.subr.bf16.mxu0 %v2235_v34 }
 0x1ea   : >> { %v1009_v8 = vpop.permute.xlu0 %1008  ;;  %v1383_v29 = vpop.permute.xlu1 %1382 }
 0x1eb   : >> { %2004 = vmatmul.mubr.msk.bf16.vlgmr.msra.gmra.mrb[16].mxu1 %vm397_vm4, %v1009_v8 }
 0x1ec   : >> { %1914 = vmatpush3.bf16.msra.mxu0 %v2401_v50  ;;  %2020 = vmatpush3.bf16.msra.mxu1 %v2533_v7 }
 0x1ed   : >> { %1915 = vmatprep.subr.bf16.mxu0 %v2235_v34  ;;  %2021 = vmatprep.subr.bf16.mxu1 %v2235_v34 }
 0x1ee   : >> { %2027 = vmatprep.mubr.msk.bf16.mxu1 %vm2236_vm5, %v2235_v34  ;;  %v938_v37 = vpop.permute.xlu0 %937 }
 0x1f0   : >> { %1916 = vmatpush3.bf16.msra.mxu0 %v2413_v51  ;;  %2022 = vmatpush3.bf16.msra.mxu1 %v2544_v9 }
 0x1f1   : >> { %1917 = vmatprep.subr.bf16.mxu0 %v2235_v34  ;;  %2023 = vmatprep.subr.bf16.mxu1 %v2235_v34 }
 0x1f4   : >> { %1918 = vmatpush3.bf16.msra.mxu0 %v2421_v52  ;;  %2024 = vmatpush3.bf16.msra.mxu1 %v2556_v11 }
 0x1f5   : >> { %1935 = vmatprep.subr.bf16.mxu0 %v2235_v34  ;;  %2025 = vmatprep.subr.bf16.mxu1 %v2235_v34 }
 0x1f7   : >> { %1920 = vmatmul.mubr.msk.bf16.vlgmr.msra.gmra.mrb[4].mxu0 %vm397_vm4, %v2563_v14 }
 0x1f8   : >> { %1936 = vmatpush3.bf16.msra.mxu0 %v2430_v53  ;;  %2026 = vmatpush3.bf16.msra.mxu1 %v2568_v15 }
 0x1f9   : >> { %1937 = vmatprep.subr.bf16.mxu0 %v2235_v34  ;;  %2043 = vmatprep.subr.bf16.mxu1 %v2235_v34 }
 0x1fa   : >> { %1943 = vmatprep.mubr.msk.bf16.mxu0 %vm2236_vm5, %v2235_v34 }
 0x1fb   : >> { %2028 = vmatmul.mubr.msk.bf16.vlgmr.msra.gmra.mrb[20].mxu1 %vm397_vm4, %v1141_v16 }
 0x1fc   : >> { %1938 = vmatpush3.bf16.msra.mxu0 %v2439_v54  ;;  %2044 = vmatpush3.bf16.msra.mxu1 %v2579_v17 }
 0x1fd   : >> { %1939 = vmatprep.subr.bf16.mxu0 %v2235_v34  ;;  %2045 = vmatprep.subr.bf16.mxu1 %v2235_v34 }
 0x1fe   : >> { %2051 = vmatprep.mubr.msk.bf16.mxu1 %vm2236_vm5, %v2235_v34 }
 0x200   : >> { %1940 = vmatpush3.bf16.msra.mxu0 %v2449_v56  ;;  %2046 = vmatpush3.bf16.msra.mxu1 %v2592_v19 }
 0x201   : >> { %1941 = vmatprep.subr.bf16.mxu0 %v2235_v34  ;;  %2047 = vmatprep.subr.bf16.mxu1 %v2235_v34 }
 0x204   : >> { %1942 = vmatpush3.bf16.msra.mxu0 %v2457_v59  ;;  %2048 = vmatpush3.bf16.msra.mxu1 %v2604_v22 }
 0x205   : >> { %1959 = vmatprep.subr.bf16.mxu0 %v2235_v34  ;;  %2049 = vmatprep.subr.bf16.mxu1 %v2235_v34 }
 0x207   : >> { %1944 = vmatmul.mubr.msk.bf16.vlgmr.msra.gmra.mrb[8].mxu0 %vm397_vm4, %v679_v23 }
 0x208   : >> { %1960 = vmatpush3.bf16.msra.mxu0 %v2466_v61  ;;  %2050 = vmatpush3.bf16.msra.mxu1 %v2613_v24 }
 0x209   : >> { %1961 = vmatprep.subr.bf16.mxu0 %v2235_v34  ;;  %2067 = vmatprep.subr.bf16.mxu1 %v2235_v34 }
 0x20a   : >> { %1967 = vmatprep.mubr.msk.bf16.mxu0 %vm2236_vm5, %v2235_v34 }
 0x20b   : >> { %2052 = vmatmul.mubr.msk.bf16.vlgmr.msra.gmra.mrb[24].mxu1 %vm397_vm4, %v2376_v45 }
 0x20c   : >> { %1962 = vmatpush3.bf16.msra.mxu0 %v2475_v62  ;;  %2068 = vmatpush3.bf16.msra.mxu1 %v2623_v25 }
 0x20d   : >> { %1963 = vmatprep.subr.bf16.mxu0 %v2235_v34  ;;  %2069 = vmatprep.subr.bf16.mxu1 %v2235_v34 }
 0x20e   : >> { %2075 = vmatprep.mubr.msk.bf16.mxu1 %vm2236_vm5, %v2235_v34 }
 0x210   : >> { %1964 = vmatpush3.bf16.msra.mxu0 %v2484_v63  ;;  %2070 = vmatpush3.bf16.msra.mxu1 %v2636_v26 }
 0x211   : >> { %1965 = vmatprep.subr.bf16.mxu0 %v2235_v34  ;;  %2071 = vmatprep.subr.bf16.mxu1 %v2235_v34 }
 0x214   : >> { %1966 = vmatpush3.bf16.msra.mxu0 %v2491_v0  ;;  %2072 = vmatpush3.bf16.msra.mxu1 %v2647_v27 }
 0x215   : >> { %1983 = vmatprep.subr.bf16.mxu0 %v2235_v34  ;;  %2073 = vmatprep.subr.bf16.mxu1 %v2235_v34 }
 0x217   : >> { %1968 = vmatmul.mubr.msk.bf16.vlgmr.msra.gmra.mrb[12].mxu0 %vm397_vm4, %v2383_v47 }
 0x218   : >> { %1984 = vmatpush3.bf16.msra.mxu0 %v2498_v1  ;;  %2074 = vmatpush3.bf16.msra.mxu1 %v2656_v28 }
 0x219   : >> { %1985 = vmatprep.subr.bf16.mxu0 %v2235_v34  ;;  %2091 = vmatprep.subr.bf16.mxu1 %v2235_v34 }
 0x21a   : >> { %1991 = vmatprep.mubr.msk.bf16.mxu0 %vm2236_vm5, %v2235_v34 }
 0x21b   : >> { %2076 = vmatmul.mubr.msk.bf16.vlgmr.msra.gmra.mrb[28].mxu1 %vm397_vm4, %v1383_v29 }
 0x21c   : >> { %1986 = vmatpush3.bf16.msra.mxu0 %v2507_v2  ;;  %2092 = vmatpush3.bf16.msra.mxu1 %v2667_v30 }
 0x21d   : >> { %1987 = vmatprep.subr.bf16.mxu0 %v2235_v34  ;;  %2093 = vmatprep.subr.bf16.mxu1 %v2235_v34 }
 0x21e   : >> { %2099 = vmatprep.mubr.msk.bf16.mxu1 %vm2236_vm5, %v2235_v34 }
 0x220   : >> { %1988 = vmatpush3.bf16.msra.mxu0 %v2516_v3  ;;  %2094 = vmatpush3.bf16.msra.mxu1 %v2186_v31 }
 0x221   : >> { %1989 = vmatprep.subr.bf16.mxu0 %v2235_v34  ;;  %2095 = vmatprep.subr.bf16.mxu1 %v2235_v34 }
 0x224   : >> { %1990 = vmatpush3.bf16.msra.mxu0 %v2523_v4  ;;  %2096 = vmatpush3.bf16.msra.mxu1 %v2187_v33 }
 0x225   : >> { %2007 = vmatprep.subr.bf16.mxu0 %v2235_v34  ;;  %2097 = vmatprep.subr.bf16.mxu1 %v2235_v34 }
 0x227   : >> { %1992 = vmatmul.mubr.msk.bf16.vlgmr.msra.gmra.mrb[16].mxu0 %vm397_vm4, %v938_v37 }
 0x228   : >> { %2008 = vmatpush3.bf16.msra.mxu0 %v2533_v7  ;;  %2098 = vmatpush3.bf16.msra.mxu1 %v2188_v38 }
 0x229   : >> { %2009 = vmatprep.subr.bf16.mxu0 %v2235_v34  ;;  %2015 = vmatprep.mubr.msk.bf16.mxu0 %vm2236_vm5, %v2235_v34 }
 0x22b   : >> { %2100 = vmatmul.mubr.msk.bf16.vlgmr.msra.gmra.mrb[32].mxu1 %vm397_vm4, %v1506_v39 }
 0x22c   : >> { %2010 = vmatpush3.bf16.msra.mxu0 %v2544_v9 }
 0x22d   : >> { %2011 = vmatprep.subr.bf16.mxu0 %v2235_v34 }
 0x230   : >> { %2012 = vmatpush3.bf16.msra.mxu0 %v2556_v11 }
 0x231   : >> { %2013 = vmatprep.subr.bf16.mxu0 %v2235_v34 }
 0x234   : >> { %2014 = vmatpush3.bf16.msra.mxu0 %v2568_v15 }
 0x235   : >> { %2031 = vmatprep.subr.bf16.mxu0 %v2235_v34 }
 0x237   : >> { %2016 = vmatmul.mubr.msk.bf16.vlgmr.msra.gmra.mrb[20].mxu0 %vm397_vm4, %v1067_v44 }
 0x238   : >> { %2032 = vmatpush3.bf16.msra.mxu0 %v2579_v17  ;;  %2039 = vmatprep.mubr.msk.bf16.mxu0 %vm2236_vm5, %v2235_v34 }
 0x239   : >> { %2033 = vmatprep.subr.bf16.mxu0 %v2235_v34 }
 0x23c   : >> { %2034 = vmatpush3.bf16.msra.mxu0 %v2592_v19 }
 0x23d   : >> { %2035 = vmatprep.subr.bf16.mxu0 %v2235_v34 }
 0x240   : >> { %2036 = vmatpush3.bf16.msra.mxu0 %v2604_v22 }
 0x241   : >> { %2037 = vmatprep.subr.bf16.mxu0 %v2235_v34 }
 0x244   : >> { %2038 = vmatpush3.bf16.msra.mxu0 %v2613_v24 }
 0x245   : >> { %2055 = vmatprep.subr.bf16.mxu0 %v2235_v34 }
 0x247   : >> { %2040 = vmatmul.mubr.msk.bf16.vlgmr.msra.gmra.mrb[24].mxu0 %vm397_vm4, %v2365_v41 }
 0x248   : >> { %2056 = vmatpush3.bf16.msra.mxu0 %v2623_v25  ;;  %2063 = vmatprep.mubr.msk.bf16.mxu0 %vm2236_vm5, %v2235_v34 }
 0x249   : >> { %2057 = vmatprep.subr.bf16.mxu0 %v2235_v34 }
 0x24c   : >> { %2058 = vmatpush3.bf16.msra.mxu0 %v2636_v26 }
 0x24d   : >> { %2059 = vmatprep.subr.bf16.mxu0 %v2235_v34 }
 0x250   : >> { %2060 = vmatpush3.bf16.msra.mxu0 %v2647_v27  ;;  %v571_v45 = vpop.f32.mrb[0].mxu1 }
 0x251   : >> { %2061 = vmatprep.subr.bf16.mxu0 %v2235_v34  ;;  %v1909_v46 = vpop.f32.mrb[1].mxu1 }
 0x252   : >> { %v574_v41 = vpop.f32.mrb[2].mxu1 }
 0x253   : >> { %v1910_v47 = vpop.f32.mrb[3].mxu1 }
 0x254   : >> { %2062 = vmatpush3.bf16.msra.mxu0 %v2656_v28 }
 0x255   : >> { %2079 = vmatprep.subr.bf16.mxu0 %v2235_v34 }
 0x257   : >> { %2064 = vmatmul.mubr.msk.bf16.vlgmr.msra.gmra.mrb[28].mxu0 %vm397_vm4, %v2563_v14 }
 0x258   : >> { %2080 = vmatpush3.bf16.msra.mxu0 %v2667_v30  ;;  %2087 = vmatprep.mubr.msk.bf16.mxu0 %vm2236_vm5, %v2235_v34 }
 0x259   : >> { %2081 = vmatprep.subr.bf16.mxu0 %v2235_v34 }
 0x25c   : >> { %2082 = vmatpush3.bf16.msra.mxu0 %v2186_v31 }
 0x25d   : >> { %2083 = vmatprep.subr.bf16.mxu0 %v2235_v34 }
 0x260   : >> { %2084 = vmatpush3.bf16.msra.mxu0 %v2187_v33  ;;  %v660_v48 = vpop.f32.mrb[4].mxu1 }
 0x261   : >> { %2085 = vmatprep.subr.bf16.mxu0 %v2235_v34  ;;  %v1933_v49 = vpop.f32.mrb[5].mxu1 }
 0x262   : >> { %v663_v50 = vpop.f32.mrb[6].mxu1 }
 0x263   : >> { %v1934_v51 = vpop.f32.mrb[7].mxu1 }
 0x264   : >> { %2086 = vmatpush3.bf16.msra.mxu0 %v2188_v38 }
 0x267   : >> { %2088 = vmatmul.mubr.msk.bf16.vlgmr.msra.gmra.mrb[32].mxu0 %vm397_vm4, %v2460_v60 }
 0x270   : >> { %v791_v52 = vpop.f32.mrb[8].mxu1 }
 0x271   : >> { %v1957_v53 = vpop.f32.mrb[9].mxu1 }
 0x272   : >> { %v794_v54 = vpop.f32.mrb[10].mxu1 }
 0x273   : >> { %v1958_v55 = vpop.f32.mrb[11].mxu1 }
 0x280   : >> { %v921_v56 = vpop.f32.mrb[12].mxu1 }
 0x281   : >> { %v1981_v57 = vpop.f32.mrb[13].mxu1 }
 0x282   : >> { %v924_v58 = vpop.f32.mrb[14].mxu1 }
 0x283   : >> { %v1982_v59 = vpop.f32.mrb[15].mxu1 }
 0x2ba   : >> { %v504_v61 = vpop.f32.mrb[0].mxu0 }
 0x2bb   : >> { %v572_v62 = vadd.f32 %v571_v45, %v504_v61  ;;  %v1897_v63 = vpop.f32.mrb[1].mxu0 }
 0x2bc   : >> { %v507_v34 = vpop.f32.mrb[2].mxu0 }
 0x2bd   : >> { %v1898_v0 = vpop.f32.mrb[3].mxu0 }
 0x2be   : >> { %v1047_v1 = vpop.f32.mrb[16].mxu1 }
 0x2bf   : >> { %v2005_v2 = vpop.f32.mrb[17].mxu1 }
 0x2c0   : >> { %v1050_v3 = vpop.f32.mrb[18].mxu1 }
 0x2c1   : >> { %v2006_v4 = vpop.f32.mrb[19].mxu1 }
 0x2ca   : >> { %v617_v6 = vpop.f32.mrb[4].mxu0 }
 0x2cb   : >> { %v661_v7 = vadd.f32 %v660_v48, %v617_v6  ;;  %v1921_v60 = vpop.f32.mrb[5].mxu0 }
 0x2cc   : >> { %v620_v8 = vpop.f32.mrb[6].mxu0 }
 0x2cd   : >> { %v797_v9 = vadd.f32 %v791_v52, %v661_v7  ;;  %v1922_v10 = vpop.f32.mrb[7].mxu0 }
 0x2ce   : >> { %v1179_v11 = vpop.f32.mrb[20].mxu1 }
 0x2cf   : >> { %v927_v12 = vadd.f32 %v921_v56, %v797_v9  ;;  %v2029_v13 = vpop.f32.mrb[21].mxu1 }
 0x2d0   : >> { %v1182_v14 = vpop.f32.mrb[22].mxu1 }
 0x2d1   : >> { %v1053_v15 = vadd.f32 %v1047_v1, %v927_v12  ;;  %v2030_v16 = vpop.f32.mrb[23].mxu1 }
 0x2d3   : >> { %v1185_v17 = vadd.f32 %v1179_v11, %v1053_v15 }
 0x2da   : >> { %v741_v18 = vpop.f32.mrb[8].mxu0 }
 0x2db   : >> { %v747_v19 = vadd.f32 %v741_v18, %v572_v62  ;;  %v1945_v20 = vpop.f32.mrb[9].mxu0 }
 0x2dc   : >> { %v744_v21 = vpop.f32.mrb[10].mxu0 }
 0x2dd   : >> { %v1946_v22 = vpop.f32.mrb[11].mxu0 }
 0x2de   : >> { %v1301_v23 = vpop.f32.mrb[24].mxu1 }
 0x2df   : >> { %v1307_v24 = vadd.f32 %v1301_v23, %v1185_v17  ;;  %v2053_v25 = vpop.f32.mrb[25].mxu1 }
 0x2e0   : >> { %v1304_v26 = vpop.f32.mrb[26].mxu1 }
 0x2e1   : >> { %v2054_v27 = vpop.f32.mrb[27].mxu1 }
 0x2ea   : >> { %v877_v28 = vpop.f32.mrb[12].mxu0 }
 0x2eb   : >> { %v883_v29 = vadd.f32 %v877_v28, %v747_v19  ;;  %v1969_v30 = vpop.f32.mrb[13].mxu0 }
 0x2ec   : >> { %v880_v31 = vpop.f32.mrb[14].mxu0 }
 0x2ed   : >> { %v1970_v32 = vpop.f32.mrb[15].mxu0 }
 0x2ee   : >> { %v1421_v33 = vpop.f32.mrb[28].mxu1 }
 0x2ef   : >> { %v1427_v35 = vadd.f32 %v1421_v33, %v1307_v24  ;;  %v2077_v36 = vpop.f32.mrb[29].mxu1 }
 0x2f0   : >> { %v1424_v37 = vpop.f32.mrb[30].mxu1 }
 0x2f1   : >> { %v2078_v38 = vpop.f32.mrb[31].mxu1 }
 0x2fa   : >> { %v1000_v39 = vpop.f32.mrb[16].mxu0 }
 0x2fb   : >> { %v1006_v40 = vadd.f32 %v1000_v39, %v883_v29  ;;  %v1993_v42 = vpop.f32.mrb[17].mxu0 }
 0x2fc   : >> { %v1003_v43 = vpop.f32.mrb[18].mxu0 }
 0x2fd   : >> { %v1994_v44 = vpop.f32.mrb[19].mxu0 }
 0x2fe   : >> { %v1544_v45 = vpop.f32.mrb[32].mxu1 }
 0x2ff   : >> { %v1550_v46 = vadd.f32 %v1544_v45, %v1427_v35  ;;  %v2101_v41 = vpop.f32.mrb[33].mxu1 }
 0x300   : >> { %v1547_v47 = vpop.f32.mrb[34].mxu1 }
 0x301   : >> { %v1559_v48 = vadd.f32 %v2314_v5, %v1550_v46  ;;  %v2102_v49 = vpop.f32.mrb[35].mxu1 }
 0x303   : >> { %v1560_v50 = vmax.f32 %v1559_v48, 0.0 }
 0x305   : >> { %1562 = vrot.lane.b32.xlu1 %v1560_v50, %s2237_s11  ;;  %s1698_s11 = sshll.u32 %s2227_s27, 2  ;;  %s412_s27 = sadd.s32 1, %s2227_s27  }
 0x306   : >> { %s1566_s25 = scalar_lea.vmem %s2319_s13, %s1698_s11  ;;  %p409_p6 = scmp.ge.s32.totalorder %s412_s27, 2  }
 0x30a   : >> { %v1129_v51 = vpop.f32.mrb[20].mxu0 }
 0x30b   : >> { %v1135_v52 = vadd.f32 %v1129_v51, %v1006_v40  ;;  %v2017_v53 = vpop.f32.mrb[21].mxu0 }
 0x30c   : >> { %v1132_v54 = vpop.f32.mrb[22].mxu0 }
 0x30d   : >> { %v2018_v55 = vpop.f32.mrb[23].mxu0 }
 0x31a   : >> { %v1257_v56 = vpop.f32.mrb[24].mxu0 }
 0x31b   : >> { %v1263_v57 = vadd.f32 %v1257_v56, %v1135_v52  ;;  %v2041_v58 = vpop.f32.mrb[25].mxu0 }
 0x31c   : >> { %v1260_v59 = vpop.f32.mrb[26].mxu0 }
 0x31d   : >> { %v2042_v61 = vpop.f32.mrb[27].mxu0 }
 0x32a   : >> { %v1374_v62 = vpop.f32.mrb[28].mxu0 }
 0x32b   : >> { %v1380_v63 = vadd.f32 %v1374_v62, %v1263_v57  ;;  %v2065_v34 = vpop.f32.mrb[29].mxu0 }
 0x32c   : >> { %v1377_v0 = vpop.f32.mrb[30].mxu0 }
 0x32d   : >> { %v2066_v1 = vpop.f32.mrb[31].mxu0 }
 0x33a   : >> { %v1494_v2 = vpop.f32.mrb[32].mxu0 }
 0x33b   : >> { %v1500_v3 = vadd.f32 %v1494_v2, %v1380_v63  ;;  %v2089_v4 = vpop.f32.mrb[33].mxu0 }
 0x33c   : >> { %v1497_v6 = vpop.f32.mrb[34].mxu0 }
 0x33d   : >> { %v2090_v7 = vpop.f32.mrb[35].mxu0  ;;  %v1557_v60 = vadd.f32 %v2314_v5, %v1500_v3 }
 0x33f   : >> { %v1558_v8 = vmax.f32 %v1557_v60, 0.0 }
 0x373   : > { %411 = sbr.rel (!%p409_p6) target bundleno = 363 (0x16b), region = 107 }
 0x377   : >> { %v1563_v9 = vpop.permute.xlu1 %1562 }
 0x378   : >> { %v1565_v10 = vsel %vm397_vm4, %v1558_v8, %v1563_v9 }
 0x379   : >> { %1567 = vst [vmem:[%s1566_s25] sm:$0xf] %v1565_v10 }
 0x37a PF: > { %s15_s20 = sadd.s32 1, %s2219_s20   ;;  %s2768_s18 = smov %s2215_s19 }
 0x37b   : > { %p12_p7 = scmp.ge.s32.totalorder %s15_s20, 4   ;;  %s2769_s19 = smov %s2771_s21 }
 0x37d   :  { %14 = sbr.rel (!%p12_p7) target bundleno = 2 (0x2), region = 118 }

</bundles_post_ra>
